<compile_context>
chip_gen: v7x
topology: tpu7x:2x2x1
jax: 0.10.0
libtpu: 0.0.40
codegen_flags: <defaults>
</compile_context>

<pallas_src>
import functools

import jax
import jax.numpy as jnp
import numpy as np
from jax import lax
from jax.experimental import pallas as pl
from jax.experimental.pallas import tpu as pltpu


def _round_up(n, m):
    return ((n + m - 1) // m) * m


# --------------------------------------------------------------------- proxy-path kernel
def _proxy_kernel(p_ref, wo1_ref, bo1_ref, wo2_ref, bo2_ref, wd_ref, bd_ref,
                  k_ref, v_ref):
    """f_object / f_down on the (tiny, M_p-padded) proxy tokens — once per batch element."""
    p = p_ref[0]  # (M_p, Cin_p) bf16, zero-padded object rows / channels

    def lin_relu(a, w_ref, b_ref):
        y = jnp.dot(a, w_ref[...], preferred_element_type=jnp.float32)
        return jnp.maximum(y + b_ref[...], 0.0).astype(jnp.bfloat16)

    k_ref[0] = lin_relu(lin_relu(p, wo1_ref, bo1_ref), wo2_ref, bo2_ref)  # (M_p, K_p)
    v_ref[0] = lin_relu(p, wd_ref, bd_ref)                                # (M_p, K_p)


# --------------------------------------------------------------------- pixel-path kernel
def _ocr_pixel_kernel(x_ref, kT_ref, v_ref,
                      wp1_ref, bp1_ref, wp2_ref, bp2_ref, wu_ref, bu_ref,
                      o_ref, *, key_channels, num_objects):
    x = x_ref[0]      # (THW, Cin_p) bf16 pixel-token tile of this batch element
    kT = kT_ref[0]    # (K_p, M_p)   bf16 precomputed f_object(proxy), transposed
    v = v_ref[0]      # (M_p, K_p)   bf16 precomputed f_down(proxy)
    m_pad = kT.shape[1]   # static padded object count

    def lin_relu_f32(a, w_ref, b_ref):
        # bf16 MXU matmul, f32 accumulate, f32 folded-BN bias, ReLU (f32 result).
        y = jnp.dot(a, w_ref[...], preferred_element_type=jnp.float32)
        return jnp.maximum(y + b_ref[...], 0.0)

    def lin_relu(a, w_ref, b_ref):
        return lin_relu_f32(a, w_ref, b_ref).astype(jnp.bfloat16)

    # query = f_pixel(x) -> (THW, K_p)
    q = lin_relu(lin_relu(x, wp1_ref, bp1_ref), wp2_ref, bp2_ref)

    # sim = key_channels^-0.5 * (q @ k^T) — plain MXU matmul, kT already transposed.
    sim = jnp.dot(q, kT, preferred_element_type=jnp.float32)
    sim = sim * (float(key_channels) ** -0.5)

    # Mask padded object columns (zero-padded proxy rows give ReLU(bias) != 0 keys).
    # Keep mask + exp in f32 so exp(-1e30 - max) underflows to exactly 0.
    if num_objects < m_pad:
        obj = lax.broadcasted_iota(jnp.int32, sim.shape, 1)
        sim = jnp.where(obj < num_objects, sim, -1e30)

    # softmax over objects (last dim), f32; divide via EUP approx reciprocal (~free slot).
    sim = sim - jnp.max(sim, axis=-1, keepdims=True)
    e = jnp.exp(sim)
    denom = jnp.sum(e, axis=-1, keepdims=True)
    attn = (e * pl.reciprocal(denom, approx=True)).astype(jnp.bfloat16)

    # context = attn @ value -> (THW, K_p), then f_up -> (THW, Cin_p)
    ctx = jnp.dot(attn, v, preferred_element_type=jnp.float32).astype(jnp.bfloat16)
    out = lin_relu_f32(ctx, wu_ref, bu_ref)

    o_ref[0] = out.astype(o_ref.dtype)   # bf16 writeback: halves the dominant HBM stream


# ----------------------------------------------------------------------------- wrapper
def spatial_ocr_context(feats_nchw, proxy_nchw, params, *,
                        tile_hw=1024, vmem_limit_bytes=48 * 1024 * 1024):
    # tile_hw: sweep per generation — ~1024 on v7x (64 MiB VMEM, 2 TCs; keeps >=2 tiles of
    # work for megacore), 1024-2048 on v5e/v6e. vmem_limit: 48 MiB is v7x-safe headroom and
    # ample for these tiles; can be raised toward ~96 MiB on v5e/v6e (128 MiB physical).
    B, Cin, H, W = feats_nchw.shape
    _, _, Hp, Wp = proxy_nchw.shape
    HW, M = H * W, Hp * Wp
    K = params["wp1"].shape[1]

    # Lane/MXU-friendly padded sizes (128 is already a full MXU pass; no gain padding more).
    Cin_p = _round_up(Cin, 128)
    K_p = _round_up(K, 128)
    M_p = _round_up(M, 128)

    # Token tile: prefer a multiple of 8 that exactly divides HW (no padded token rows,
    # exact output slab -> wrapper slice is a no-op on the token axis).
    if HW % 8 == 0:
        t = min(max(8, (tile_hw // 8) * 8), HW)
        while HW % t:
            t -= 8
        THW, HW_p = t, HW
    else:
        THW = min(_round_up(HW, 8), _round_up(max(8, tile_hw), 8))
        HW_p = _round_up(HW, THW)

    # NCHW -> (B, tokens, C); pad tokens/channels; cast activations to bf16.
    x = jnp.transpose(feats_nchw, (0, 2, 3, 1)).reshape(B, HW, Cin)
    p = jnp.transpose(proxy_nchw, (0, 2, 3, 1)).reshape(B, M, Cin)
    x = jnp.pad(x, ((0, 0), (0, HW_p - HW), (0, Cin_p - Cin))).astype(jnp.bfloat16)
    p = jnp.pad(p, ((0, 0), (0, M_p - M), (0, Cin_p - Cin))).astype(jnp.bfloat16)

    def pad_w(w, r, c):   # bf16 MXU operand, zero-padded
        return jnp.pad(w, ((0, r - w.shape[0]), (0, c - w.shape[1]))).astype(jnp.bfloat16)

    def pad_b(b, c):      # f32 folded-BN bias, zero-padded
        return jnp.pad(b, ((0, 0), (0, c - b.shape[1]))).astype(jnp.float32)

    proxy_weights = [
        pad_w(params["wo1"], Cin_p, K_p), pad_b(params["bo1"], K_p),
        pad_w(params["wo2"], K_p, K_p),   pad_b(params["bo2"], K_p),
        pad_w(params["wd"],  Cin_p, K_p), pad_b(params["bd"],  K_p),
    ]
    pixel_weights = [
        pad_w(params["wp1"], Cin_p, K_p), pad_b(params["bp1"], K_p),
        pad_w(params["wp2"], K_p, K_p),   pad_b(params["bp2"], K_p),
        pad_w(params["wu"],  K_p, Cin_p), pad_b(params["bu"],  Cin_p),
    ]

    # ---- proxy path (f_object / f_down): once per batch element, hoisted out of the hot loop.
    k_obj, v_obj = pl.pallas_call(
        _proxy_kernel,
        out_shape=(jax.ShapeDtypeStruct((B, M_p, K_p), jnp.bfloat16),
                   jax.ShapeDtypeStruct((B, M_p, K_p), jnp.bfloat16)),
        grid_spec=pltpu.PrefetchScalarGridSpec(
            num_scalar_prefetch=0,
            grid=(B,),
            in_specs=[pl.BlockSpec((1, M_p, Cin_p), lambda b: (b, 0, 0))]
                     + [pl.BlockSpec(w.shape, lambda b: (0, 0)) for w in proxy_weights],
            out_specs=[pl.BlockSpec((1, M_p, K_p), lambda b: (b, 0, 0)),
                       pl.BlockSpec((1, M_p, K_p), lambda b: (b, 0, 0))]),
        compiler_params=pltpu.CompilerParams(dimension_semantics=("parallel",)),
    )(p, *proxy_weights)

    # Tiny (B, M_p, K_p) bf16 transpose in XLA so the hot kernel's sim is a plain
    # (THW,K)@(K,M) MXU matmul (no transposed-rhs / XLU risk inside the kernel).
    kT = jnp.swapaxes(k_obj, 1, 2)

    # ---- pixel path: tiled over (batch, token tiles), both megacore-parallel.
    grid = (B, HW_p // THW)
    out_flat = pl.pallas_call(
        functools.partial(_ocr_pixel_kernel, key_channels=K, num_objects=M),
        out_shape=jax.ShapeDtypeStruct((B, HW_p, Cin_p), jnp.bfloat16),
        grid_spec=pltpu.PrefetchScalarGridSpec(
            num_scalar_prefetch=0,
            grid=grid,
            in_specs=[
                pl.BlockSpec((1, THW, Cin_p), lambda b, t: (b, t, 0)),
                pl.BlockSpec((1, K_p, M_p), lambda b, t: (b, 0, 0)),
                pl.BlockSpec((1, M_p, K_p), lambda b, t: (b, 0, 0)),
            ] + [pl.BlockSpec(w.shape, lambda b, t: (0, 0)) for w in pixel_weights],
            out_specs=pl.BlockSpec((1, THW, Cin_p), lambda b, t: (b, t, 0)),
        ),
        compiler_params=pltpu.CompilerParams(
            dimension_semantics=("parallel", "parallel"),
            vmem_limit_bytes=vmem_limit_bytes,
        ),
    )(x, kT, v_obj, *pixel_weights)

    # Strip padding (no-op when THW | HW and Cin % 128 == 0), back to NCHW; the f32 cast
    # fuses with the final transpose.
    out = out_flat[:, :HW, :Cin].reshape(B, H, W, Cin)
    return jnp.transpose(out, (0, 3, 1, 2)).astype(feats_nchw.dtype)


# ----------------------------------------------------------------------------- params
def _fold_bn(key, cin, cout, eps=1e-5):
    """Deterministic 1x1-conv weight + inference-mode BN, folded into (W_f, bias)."""
    k1, k2, k3, k4, k5 = jax.random.split(key, 5)
    w = jax.random.normal(k1, (cin, cout), jnp.float32) * 0.1
    gamma = jax.random.uniform(k2, (cout,), jnp.float32, 0.8, 1.2)
    beta = jax.random.normal(k3, (cout,), jnp.float32) * 0.05
    mean = jax.random.normal(k4, (cout,), jnp.float32) * 0.05
    var = jax.random.uniform(k5, (cout,), jnp.float32, 0.8, 1.2)
    s = gamma / jnp.sqrt(var + eps)
    w_f = w * s[None, :]
    bias = (beta - mean * s).reshape(1, cout)
    return w_f, bias


def make_params(key, in_channels, key_channels):
    ks = jax.random.split(key, 6)
    wp1, bp1 = _fold_bn(ks[0], in_channels, key_channels)
    wp2, bp2 = _fold_bn(ks[1], key_channels, key_channels)
    wo1, bo1 = _fold_bn(ks[2], in_channels, key_channels)
    wo2, bo2 = _fold_bn(ks[3], key_channels, key_channels)
    wd, bd = _fold_bn(ks[4], in_channels, key_channels)
    wu, bu = _fold_bn(ks[5], key_channels, in_channels)
    return dict(wp1=wp1, bp1=bp1, wp2=wp2, bp2=bp2,
                wo1=wo1, bo1=bo1, wo2=wo2, bo2=bo2,
                wd=wd, bd=bd, wu=wu, bu=bu)


# ----------------------------------------------------------------------------- pure-JAX reference
def reference(feats_nchw, proxy_nchw, params):
    B, Cin, H, W = feats_nchw.shape
    _, _, Hp, Wp = proxy_nchw.shape
    K = params["wp1"].shape[1]
    x = jnp.transpose(feats_nchw, (0, 2, 3, 1)).reshape(B, H * W, Cin)
    p = jnp.transpose(proxy_nchw, (0, 2, 3, 1)).reshape(B, Hp * Wp, Cin)

    def lr(a, w, b):
        return jnp.maximum(jnp.einsum("btc,cd->btd", a, w) + b, 0.0)

    q = lr(lr(x, params["wp1"], params["bp1"]), params["wp2"], params["bp2"])
    k = lr(lr(p, params["wo1"], params["bo1"]), params["wo2"], params["bo2"])
    v = lr(p, params["wd"], params["bd"])
    sim = jnp.einsum("bqk,bmk->bqm", q, k) * (float(K) ** -0.5)
    sim = jax.nn.softmax(sim, axis=-1)
    ctx = jnp.einsum("bqm,bmk->bqk", sim, v)
    out = lr(ctx, params["wu"], params["bu"])
    return jnp.transpose(out.reshape(B, H, W, Cin), (0, 3, 1, 2))


# ----------------------------------------------------------------------------- main
if __name__ == "__main__":
    B, Cin, H, W = 2, 32, 16, 16      # feats: N x C x H x W
    Kc = 16                           # key_channels
    M = 8                             # number of proxy/object regions (proxy: N x C x M x 1)

    key = jax.random.PRNGKey(0)
    k_feat, k_proxy, k_param = jax.random.split(key, 3)
    feats = jax.random.normal(k_feat, (B, Cin, H, W), jnp.float32)
    proxy = jax.random.normal(k_proxy, (B, Cin, M, 1), jnp.float32)
    params = make_params(k_param, Cin, Kc)

    out = spatial_ocr_context(feats, proxy, params)
    out = jax.block_until_ready(out)

    ref = jax.block_until_ready(reference(feats, proxy, params))
    # bf16 MXU operands, bf16 output store + approx reciprocal -> loosened tolerance vs. f32 ref.
    np.testing.assert_allclose(np.asarray(out), np.asarray(ref), rtol=5e-2, atol=3e-2)
    assert out.shape == (B, Cin, H, W)

    print("KERNEL_OK")
</pallas_src>

<mosaic_0001>
module attributes {stable_mosaic.version = 11 : i64} {
  func.func @_proxy_kernel(%arg0: i32, %arg1: memref<1x128x128xbf16, #tpu.memory_space<vmem>>, %arg2: memref<128x128xbf16, #tpu.memory_space<vmem>>, %arg3: memref<1x128xf32, #tpu.memory_space<vmem>>, %arg4: memref<128x128xbf16, #tpu.memory_space<vmem>>, %arg5: memref<1x128xf32, #tpu.memory_space<vmem>>, %arg6: memref<128x128xbf16, #tpu.memory_space<vmem>>, %arg7: memref<1x128xf32, #tpu.memory_space<vmem>>, %arg8: memref<1x128x128xbf16, #tpu.memory_space<vmem>>, %arg9: memref<1x128x128xbf16, #tpu.memory_space<vmem>>) attributes {dimension_semantics = [#tpu.dimension_semantics<parallel>], iteration_bounds = array<i64: 2>, scalar_prefetch = 0 : i64, scratch_operands = 0 : i64, tpu.core_type = #tpu.core_type<tc>, window_params = [{transform_indices = @transform_0, window_bounds = array<i64: 1, 128, 128>}, {pipeline_mode = #tpu.pipeline_mode<synchronous>, transform_indices = @transform_1, window_bounds = array<i64: 128, 128>}, {pipeline_mode = #tpu.pipeline_mode<synchronous>, transform_indices = @transform_2, window_bounds = array<i64: 1, 128>}, {pipeline_mode = #tpu.pipeline_mode<synchronous>, transform_indices = @transform_3, window_bounds = array<i64: 128, 128>}, {pipeline_mode = #tpu.pipeline_mode<synchronous>, transform_indices = @transform_4, window_bounds = array<i64: 1, 128>}, {pipeline_mode = #tpu.pipeline_mode<synchronous>, transform_indices = @transform_5, window_bounds = array<i64: 128, 128>}, {pipeline_mode = #tpu.pipeline_mode<synchronous>, transform_indices = @transform_6, window_bounds = array<i64: 1, 128>}, {transform_indices = @transform_7, window_bounds = array<i64: 1, 128, 128>}, {transform_indices = @transform_8, window_bounds = array<i64: 1, 128, 128>}]} {
    %c0 = arith.constant 0 : index
    %c0_0 = arith.constant 0 : index
    %c0_1 = arith.constant 0 : index
    %0 = vector.load %arg1[%c0, %c0_0, %c0_1] : memref<1x128x128xbf16, #tpu.memory_space<vmem>>, vector<1x128x128xbf16>
    %1 = vector.shape_cast %0 : vector<1x128x128xbf16> to vector<128x128xbf16>
    %c0_2 = arith.constant 0 : index
    %c0_3 = arith.constant 0 : index
    %2 = vector.load %arg2[%c0_2, %c0_3] : memref<128x128xbf16, #tpu.memory_space<vmem>>, vector<128x128xbf16>
    %cst = arith.constant dense<0.000000e+00> : vector<128x128xf32>
    %3 = tpu.matmul %1, %2, %cst {dimension_numbers = #tpu.dot_dimension_numbers<[1], [0], [0], [1], [0, 0, 1, 1], [], []>} : vector<128x128xbf16>, vector<128x128xbf16>, vector<128x128xf32> -> vector<128x128xf32>
    %c0_4 = arith.constant 0 : index
    %c0_5 = arith.constant 0 : index
    %4 = vector.load %arg3[%c0_4, %c0_5] : memref<1x128xf32, #tpu.memory_space<vmem>>, vector<1x128xf32>
    %5 = vector.broadcast %4 : vector<1x128xf32> to vector<128x128xf32>
    %6 = arith.addf %3, %5 : vector<128x128xf32>
    %cst_6 = arith.constant 0.000000e+00 : f32
    %7 = vector.broadcast %cst_6 : f32 to vector<128x128xf32>
    %8 = arith.maximumf %6, %7 : vector<128x128xf32>
    %9 = arith.truncf %8 : vector<128x128xf32> to vector<128x128xbf16>
    %c0_7 = arith.constant 0 : index
    %c0_8 = arith.constant 0 : index
    %10 = vector.load %arg4[%c0_7, %c0_8] : memref<128x128xbf16, #tpu.memory_space<vmem>>, vector<128x128xbf16>
    %cst_9 = arith.constant dense<0.000000e+00> : vector<128x128xf32>
    %11 = tpu.matmul %9, %10, %cst_9 {dimension_numbers = #tpu.dot_dimension_numbers<[1], [0], [0], [1], [0, 0, 1, 1], [], []>} : vector<128x128xbf16>, vector<128x128xbf16>, vector<128x128xf32> -> vector<128x128xf32>
    %c0_10 = arith.constant 0 : index
    %c0_11 = arith.constant 0 : index
    %12 = vector.load %arg5[%c0_10, %c0_11] : memref<1x128xf32, #tpu.memory_space<vmem>>, vector<1x128xf32>
    %13 = vector.broadcast %12 : vector<1x128xf32> to vector<128x128xf32>
    %14 = arith.addf %11, %13 : vector<128x128xf32>
    %cst_12 = arith.constant 0.000000e+00 : f32
    %15 = vector.broadcast %cst_12 : f32 to vector<128x128xf32>
    %16 = arith.maximumf %14, %15 : vector<128x128xf32>
    %17 = arith.truncf %16 : vector<128x128xf32> to vector<128x128xbf16>
    %c0_13 = arith.constant 0 : index
    %c0_14 = arith.constant 0 : index
    %c0_15 = arith.constant 0 : index
    %18 = vector.load %arg8[%c0_13, %c0_14, %c0_15] : memref<1x128x128xbf16, #tpu.memory_space<vmem>>, vector<1x128x128xbf16>
    %19 = vector.shape_cast %18 : vector<1x128x128xbf16> to vector<128x128xbf16>
    %20 = vector.shape_cast %17 : vector<128x128xbf16> to vector<1x128x128xbf16>
    tpu.vector_store %arg8[%c0_13, %c0_14, %c0_15], %20 {strides = array<i32>} : memref<1x128x128xbf16, #tpu.memory_space<vmem>>, vector<1x128x128xbf16>,
    %c0_16 = arith.constant 0 : index
    %c0_17 = arith.constant 0 : index
    %21 = vector.load %arg6[%c0_16, %c0_17] : memref<128x128xbf16, #tpu.memory_space<vmem>>, vector<128x128xbf16>
    %cst_18 = arith.constant dense<0.000000e+00> : vector<128x128xf32>
    %22 = tpu.matmul %1, %21, %cst_18 {dimension_numbers = #tpu.dot_dimension_numbers<[1], [0], [0], [1], [0, 0, 1, 1], [], []>} : vector<128x128xbf16>, vector<128x128xbf16>, vector<128x128xf32> -> vector<128x128xf32>
    %c0_19 = arith.constant 0 : index
    %c0_20 = arith.constant 0 : index
    %23 = vector.load %arg7[%c0_19, %c0_20] : memref<1x128xf32, #tpu.memory_space<vmem>>, vector<1x128xf32>
    %24 = vector.broadcast %23 : vector<1x128xf32> to vector<128x128xf32>
    %25 = arith.addf %22, %24 : vector<128x128xf32>
    %cst_21 = arith.constant 0.000000e+00 : f32
    %26 = vector.broadcast %cst_21 : f32 to vector<128x128xf32>
    %27 = arith.maximumf %25, %26 : vector<128x128xf32>
    %28 = arith.truncf %27 : vector<128x128xf32> to vector<128x128xbf16>
    %c0_22 = arith.constant 0 : index
    %c0_23 = arith.constant 0 : index
    %c0_24 = arith.constant 0 : index
    %29 = vector.load %arg9[%c0_22, %c0_23, %c0_24] : memref<1x128x128xbf16, #tpu.memory_space<vmem>>, vector<1x128x128xbf16>
    %30 = vector.shape_cast %29 : vector<1x128x128xbf16> to vector<128x128xbf16>
    %31 = vector.shape_cast %28 : vector<128x128xbf16> to vector<1x128x128xbf16>
    tpu.vector_store %arg9[%c0_22, %c0_23, %c0_24], %31 {strides = array<i32>} : memref<1x128x128xbf16, #tpu.memory_space<vmem>>, vector<1x128x128xbf16>,
    return
  }
  func.func @transform_0(%arg0: i32) -> (i32, i32, i32) {
    %c0_i32 = arith.constant 0 : i32
    %c0_i32_0 = arith.constant 0 : i32
    %c0_i32_1 = arith.constant 0 : i32
    return %arg0, %c0_i32, %c0_i32_0 : i32, i32, i32
  }
  func.func @transform_1(%arg0: i32) -> (i32, i32) {
    %c0_i32 = arith.constant 0 : i32
    %c0_i32_0 = arith.constant 0 : i32
    %c0_i32_1 = arith.constant 0 : i32
    return %c0_i32, %c0_i32_0 : i32, i32
  }
  func.func @transform_2(%arg0: i32) -> (i32, i32) {
    %c0_i32 = arith.constant 0 : i32
    %c0_i32_0 = arith.constant 0 : i32
    %c0_i32_1 = arith.constant 0 : i32
    return %c0_i32, %c0_i32_0 : i32, i32
  }
  func.func @transform_3(%arg0: i32) -> (i32, i32) {
    %c0_i32 = arith.constant 0 : i32
    %c0_i32_0 = arith.constant 0 : i32
    %c0_i32_1 = arith.constant 0 : i32
    return %c0_i32, %c0_i32_0 : i32, i32
  }
  func.func @transform_4(%arg0: i32) -> (i32, i32) {
    %c0_i32 = arith.constant 0 : i32
    %c0_i32_0 = arith.constant 0 : i32
    %c0_i32_1 = arith.constant 0 : i32
    return %c0_i32, %c0_i32_0 : i32, i32
  }
  func.func @transform_5(%arg0: i32) -> (i32, i32) {
    %c0_i32 = arith.constant 0 : i32
    %c0_i32_0 = arith.constant 0 : i32
    %c0_i32_1 = arith.constant 0 : i32
    return %c0_i32, %c0_i32_0 : i32, i32
  }
  func.func @transform_6(%arg0: i32) -> (i32, i32) {
    %c0_i32 = arith.constant 0 : i32
    %c0_i32_0 = arith.constant 0 : i32
    %c0_i32_1 = arith.constant 0 : i32
    return %c0_i32, %c0_i32_0 : i32, i32
  }
  func.func @transform_7(%arg0: i32) -> (i32, i32, i32) {
    %c0_i32 = arith.constant 0 : i32
    %c0_i32_0 = arith.constant 0 : i32
    %c0_i32_1 = arith.constant 0 : i32
    return %arg0, %c0_i32, %c0_i32_0 : i32, i32, i32
  }
  func.func @transform_8(%arg0: i32) -> (i32, i32, i32) {
    %c0_i32 = arith.constant 0 : i32
    %c0_i32_0 = arith.constant 0 : i32
    %c0_i32_1 = arith.constant 0 : i32
    return %arg0, %c0_i32, %c0_i32_0 : i32, i32, i32
  }
}

</mosaic_0001>

<bundles_post_ra>
// kernel: tpu_custom_call.1
= control target key start
LH: loop header
LB: loop body
LE: loop exit
PB: predicated region body
PF: predicated region fallthrough
CT: control target
= control target key end

     0   :  { %14 = vsyncpa [#allocation3], 0  ;;  %s2554_s0 = inlined_call_operand.hbm [shape: bf16[2,128,128], index: 0, kind: input, shape index: {}]   ;;  %s2555_s1 = inlined_call_operand.hbm [shape: bf16[128,128], index: 1, kind: input, shape index: {}]   ;;  %s2556_s2 = inlined_call_operand.vmem [shape: f32[1,128], index: 2, kind: input, shape index: {}]   ;;  %s2557_s3 = inlined_call_operand.hbm [shape: bf16[128,128], index: 3, kind: input, shape index: {}]   ;;  %s2558_s4 = inlined_call_operand.vmem [shape: f32[1,128], index: 4, kind: input, shape index: {}]   ;;  %s2559_s5 = inlined_call_operand.hbm [shape: bf16[128,128], index: 5, kind: input, shape index: {}]   ;;  %s2560_s6 = inlined_call_operand.vmem [shape: f32[1,128], index: 6, kind: input, shape index: {}]   ;;  %s2561_s7 = inlined_call_operand.hbm [shape: bf16[2,128,128], index: 7, kind: output, shape index: {0}]   ;;  %s2562_s8 = inlined_call_operand.hbm [shape: bf16[2,128,128], index: 8, kind: output, shape index: {1}]  }
   0x1   :  { %16 = vsyncpa [#allocation3 + $0x1], 0 }
   0x2   :  { %17 = vsyncpa [#allocation6], 0 }
   0x3   :  { %18 = vsyncpa [#allocation9], 0 }
   0x4   :  { %19 = vsyncpa [#allocation4], 0 }
   0x5   :  { %21 = vsyncpa [#allocation4 + $0x1], 0 }
   0x6   :  { %22 = vsyncpa [#allocation12], 0 }
   0x7   :  { %24 = vsyncpa [#allocation12 + $0x1], 0  ;;  %s2108_s27 = smov 0   ;;  %s2110_s28 = smov 0  }
   0x8   :  { %s2112_s29 = smov 0   ;;  %s2114_s30 = smov 0  }
   0x9 LB: > { %2568 = sst [smem:[#allocation18_spill]] %s2039_s27  ;;  %s2129_s9 = sadd.s32 4294967295, %s2051_s30   ;;  %s2051_s30 = sphi %s2114_s30, %s2591_s30   ;;  %s2047_s29 = sphi %s2112_s29, %s2590_s29   ;;  %s2043_s28 = sphi %s2110_s28, %s2589_s28   ;;  %s2039_s27 = sphi %s2108_s27, %s2588_s27  }
   0xa   : > { %s1333_s10 = sadd.s32 4294967294, %s2051_s30   ;;  %p50_p0 = scmp.ne.s32.totalorder %s2043_s28, %s2039_s27 }
   0xb   : > { %p2563_p1 = scmp.eq.s32.totalorder %s2129_s9, 0  ;;  %p206_p3 = scmp.eq.s32.totalorder %s1333_s10, 1 }
   0xc   : > { %p1334_p5 = scmp.ge.s32.totalorder %s2051_s30, 1  ;;  %p239_p7 = scmp.lt.s32.totalorder %s2051_s30, 3 }
   0xd   : > { %p2138_p4 = por %p2563_p1, %p50_p0  ;;  %p2143_p6 = por %p206_p3, %p50_p0 }
   0xe   : > { %p2148_p8 = pnand %p1334_p5, %p239_p7  ;;  %s2053_s14 = smov [#allocation5]  }
   0xf   : > { %s2569_s11 = scalar_select %p2138_p4, 1, 0 }
  0x10   : > { %s2570_s12 = scalar_select %p2143_p6, 1, 0 }
  0x11   : > { %s2572_s13 = scalar_select %p2148_p8, 1, 0 }
  0x12   : > { %2571 = sst [smem:[#allocation19_spill]] %s2570_s12  ;;  %s251_s15 = sshll.u32 %s2053_s14, 4  ;;  %s2152_s15 = int_to_ptr.vmem [resolvable:$true] %s251_s15 }
  0x13   : > { %p1731_p9 = pneg %p2148_p8  ;;  %s2054_s17 = smov [#allocation7]  }
  0x14   : > { %s267_s18 = sshll.u32 %s2054_s17, 4  ;;  %s2055_s19 = smov [#allocation8]   ;;  %s2163_s18 = int_to_ptr.vmem [resolvable:$true] %s267_s18 }
  0x15   : > { %p2159_p11 = pnand %p1731_p9, %p2563_p1  ;;  %s2165_s20 = sshll.u32 %s2055_s19, 4  ;;  %s284_s20 = int_to_ptr.vmem [resolvable:$true] %s2165_s20 }
  0x16   : > { %s1831_s23 = scalar_lea.hbm %s2555_s1, 1024 }
  0x17   : > { %p1832_p12 = scmp.ne.s32.totalorder %s2555_s1, %s1831_s23  ;;  %p2175_p13 = pneg %p2159_p11 }
  0x18   : > { %p1838_p5 = scmp.lt.u32.totalorder %s1831_s23, %s2555_s1 }
  0x19   : > { %p1834_p0 = pnand %p2175_p13, %p1832_p12 }
  0x1b   : > { %p1835_p3 = pneg %p1834_p0 }
  0x1d   : > { %p1840_p7 = pnand %p1838_p5, %p1835_p3 }
  0x1f   : > { %1843 = shalt.err (!%p1840_p7)
}
  0x20   : > { %s1844_s17 = scalar_lea.vmem %s2152_s15, 1024  ;;  %p1852_p2 = scmp.lt.s32.totalorder %s2152_s15, %s2152_s15 }
  0x21   : > { %p1845_p9 = scmp.ne.s32.totalorder %s2152_s15, %s1844_s17  ;;  %p1853_p6 = scmp.lt.s32.totalorder %s1844_s17, %s1844_s17 }
  0x23   : > { %p1847_p10 = pnand %p1845_p9, %p2175_p13  ;;  %p1854_p12 = por %p1853_p6, %p1852_p2 }
  0x25   : > { %p1848_p1 = pneg %p1847_p10 }
  0x27   : > { %p1855_p0 = pnand %p1854_p12, %p1848_p1 }
  0x29   : > { %1858 = shalt.err (!%p1855_p0)
}
  0x2a   : > { %s2056_s19 = smov 64   ;;  %s2057_s21 = smov 4  }
  0x2b   : > { %1734 = dma.hbm_to_vmem [thread:$0]  (!%p2159_p11), %s2555_s1, 1024, %s2152_s15, [#allocation6], %s2056_s19, %s2056_s19, %s2057_s21  }
  0x2c   : > { %s1859_s10 = scalar_lea.hbm %s2557_s3, 1024 }
  0x2d   : > { %p1860_p1 = scmp.ne.s32.totalorder %s2557_s3, %s1859_s10  ;;  %p1866_p10 = scmp.lt.u32.totalorder %s1859_s10, %s2557_s3 }
  0x2f   : > { %p1862_p2 = pnand %p1860_p1, %p2175_p13 }
  0x31   : > { %p1863_p6 = pneg %p1862_p2 }
  0x33   : > { %p1868_p3 = pnand %p1866_p10, %p1863_p6 }
  0x35   : > { %1871 = shalt.err (!%p1868_p3)
}
  0x36   : > { %s1872_s15 = scalar_lea.vmem %s2163_s18, 1024  ;;  %p1880_p12 = scmp.lt.s32.totalorder %s2163_s18, %s2163_s18 }
  0x37   : > { %p1873_p5 = scmp.ne.s32.totalorder %s2163_s18, %s1872_s15  ;;  %p1881_p0 = scmp.lt.s32.totalorder %s1872_s15, %s1872_s15 }
  0x39   : > { %p1875_p7 = pnand %p1873_p5, %p2175_p13  ;;  %p1882_p1 = por %p1881_p0, %p1880_p12 }
  0x3b   : > { %p1876_p9 = pneg %p1875_p7 }
  0x3d   : > { %p1883_p2 = pnand %p1882_p1, %p1876_p9 }
  0x3f   : > { %1886 = shalt.err (!%p1883_p2)
}
  0x40   : > { %1737 = dma.hbm_to_vmem [thread:$0]  (!%p2159_p11), %s2557_s3, 1024, %s2163_s18, [#allocation6], %s2056_s19, %s2056_s19, %s2057_s21  }
  0x41   : > { %s1887_s24 = scalar_lea.hbm %s2559_s5, 1024 }
  0x42   : > { %p1888_p6 = scmp.ne.s32.totalorder %s2559_s5, %s1887_s24  ;;  %p1894_p5 = scmp.lt.u32.totalorder %s1887_s24, %s2559_s5 }
  0x44   : > { %p1890_p10 = pnand %p1888_p6, %p2175_p13 }
  0x46   : > { %p1891_p3 = pneg %p1890_p10 }
  0x48   : > { %p1896_p7 = pnand %p1894_p5, %p1891_p3 }
  0x4a   : > { %1899 = shalt.err (!%p1896_p7)
}
  0x4b   : > { %s1900_s15 = scalar_lea.vmem %s284_s20, 1024  ;;  %p1908_p1 = scmp.lt.s32.totalorder %s284_s20, %s284_s20 }
  0x4c   : > { %p1901_p9 = scmp.ne.s32.totalorder %s284_s20, %s1900_s15  ;;  %p1909_p2 = scmp.lt.s32.totalorder %s1900_s15, %s1900_s15 }
  0x4e   : > { %p1903_p12 = pnand %p1901_p9, %p2175_p13  ;;  %p1910_p4 = por %p1909_p2, %p1908_p1 }
  0x50   : > { %p1904_p0 = pneg %p1903_p12 }
  0x52   : > { %p1911_p8 = pnand %p1910_p4, %p1904_p0 }
  0x54   : > { %1914 = shalt.err (!%p1911_p8)
}
  0x55   : > { %1740 = dma.hbm_to_vmem [thread:$0]  (!%p2159_p11), %s2559_s5, 1024, %s284_s20, [#allocation9], %s2056_s19, %s2056_s19, %s2057_s21  }
  0x56   : > { %s2248_s26 = sadd.s32 1, %s2051_s30   ;;  %s37_s12 = sadd.s32 1, %s2047_s29 }
  0x57   : > { %s34_s16 = ssub.s32 %s2051_s30, %s2248_s26  ;;  %p44_p8 = scmp.ne.s32.totalorder %s2047_s29, %s2043_s28 }
  0x58   : > { %p35_p4 = scmp.eq.s32.totalorder %s34_s16, 0  ;;  %p45_p13 = scmp.eq.s32.totalorder %s2051_s30, 0 }
  0x59   : > { %p1755_p6 = scmp.lt.s32.totalorder %s2051_s30, 2  ;;  %p2575_p3 = scmp.eq.s32.totalorder %s2129_s9, 1 }
  0x5a   : > { %s2258_s22 = scalar_select %p35_p4, %s2047_s29, %s37_s12  }
  0x5b   : > { %p46_p10 = por %p45_p13, %p44_p8  ;;  %p2262_p5 = por %p2575_p3, %p44_p8 }
  0x5c   : > { %s300_s24 = sand.u32 1, %s2047_s29   ;;  %s1424_s25 = sshll.u32 %s2051_s30, 10 }
  0x5d   : > { %s1339_s20 = sshll.u32 %s300_s24, 6  ;;  %s2271_s17 = scalar_lea.hbm %s2554_s0, %s1424_s25 }
  0x5e   : > { %s304_s15 = scalar_lea.vmem [#allocation2], %s1339_s20  ;;  %p2273_p11 = pnand %p1755_p6, %p46_p10 }
  0x5f   : > { %s311_s18 = sshll.u32 %s304_s15, 4  ;;  %s2279_s16 = scalar_lea.sflag [#allocation3], %s300_s24  ;;  %s2277_s18 = int_to_ptr.vmem [resolvable:$true] %s311_s18 }
  0x60   : > { %s1915_s12 = scalar_lea.hbm %s2271_s17, 1024  ;;  %p1917_p9 = pneg %p2273_p11 }
  0x61   : > { %p1916_p7 = scmp.ne.s32.totalorder %s2271_s17, %s1915_s12  ;;  %s1920_s10 = scalar_lea.hbm %s2554_s0, 2048 }
  0x62   : > { %p1921_p1 = scmp.lt.u32.totalorder %s2271_s17, %s2554_s0  ;;  %p1922_p2 = scmp.lt.u32.totalorder %s1920_s10, %s1915_s12 }
  0x63   : > { %p1918_p12 = pnand %p1917_p9, %p1916_p7  ;;  %p1924_p8 = scmp.lt.u32.totalorder %s1915_s12, %s2271_s17 }
  0x64   : > { %p1923_p4 = por %p1922_p2, %p1921_p1 }
  0x65   : > { %p1919_p0 = pneg %p1918_p12 }
  0x66   : > { %p1925_p13 = por %p1924_p8, %p1923_p4 }
  0x68   : > { %p1926_p6 = pnand %p1925_p13, %p1919_p0 }
  0x6a   : > { %1929 = shalt.err (!%p1926_p6)
}
  0x6b   : > { %s1930_s24 = scalar_lea.vmem %s2277_s18, 1024  ;;  %s2058_s25 = smov [#allocation2]  }
  0x6c   : > { %p1931_p10 = scmp.ne.s32.totalorder %s2277_s18, %s1930_s24  ;;  %s1935_s20 = sshll.u32 %s2058_s25, 4  ;;  %s1936_s20 = int_to_ptr.vmem [resolvable:$false] %s1935_s20 }
  0x6d   : > { %s1937_s14 = scalar_lea.vmem %s1936_s20, 2048  ;;  %p1938_p12 = scmp.lt.s32.totalorder %s2277_s18, %s1936_s20 }
  0x6e   : > { %p1933_p3 = pnand %p1931_p10, %p1917_p9  ;;  %p1939_p1 = scmp.lt.s32.totalorder %s1937_s14, %s1930_s24 }
  0x70   : > { %p1934_p7 = pneg %p1933_p3  ;;  %p1940_p2 = por %p1939_p1, %p1938_p12 }
  0x72   : > { %p1941_p4 = pnand %p1940_p2, %p1934_p7 }
  0x74   : > { %1944 = shalt.err (!%p1941_p4)
}
  0x75   : > { %1744 = dma.hbm_to_vmem [thread:$0]  (!%p2273_p11), %s2271_s17, 1024, %s2277_s18, %s2279_s16, %s2056_s19, %s2056_s19, %s2057_s21  }
  0x76   : > { %p2578_p9 = scmp.ne.s32.totalorder %s2572_s13, 0 }
  0x77   : > { %s2313_s12 = sand.u32 (!%p2578_p9), 1, %s2043_s28   ;;  %p2579_p0 = scmp.ne.s32.totalorder (!%p2578_p9), %s2569_s11, 0 }
  0x78   : > { %323 = sbr.rel (%p2578_p9) target bundleno = 675 (0x2a3), region = 48  ;;  %s2316_s10 = sshll.u32 (!%p2578_p9), %s2313_s12, 6 }
  0x79   : > { %s326_s27 = scalar_lea.sflag (!%p2578_p9), [#allocation3], %s2313_s12  ;;  %s2320_s15 = scalar_lea.vmem (!%p2578_p9), [#allocation2], %s2316_s10 }
  0x7f   : > { %2018 = dma.done.wait (%p2579_p0), %s326_s27, 1024  }
  0x80   : > { %2020 = vsyncadd (%p2579_p0), %s326_s27, 4294966272  ;;  %p2580_p11 = scmp.eq.s32.totalorder %s2129_s9, 0 }
  0x82   : > { %2022 = dma.done.wait (%p2580_p11), [#allocation6], 2048   ;;  %p2581_p8 = pmov %p2580_p11 }
  0x84   : > { %2024 = vsyncadd (%p2581_p8), [#allocation6], 4294965248  ;;  %p2582_p13 = pmov %p2581_p8 }
  0x85   : > { %p2583_p6 = pmov %p2581_p8 }
  0x86   : > { %2026 = dma.done.wait (%p2582_p13), [#allocation9], 1024  }
  0x87   : > { %2028 = vsyncadd (%p2583_p6), [#allocation9], 4294966272  ;;  %v1799_v0 = vld [vmem:[#allocation5] sm:$0xff]   ;;  %v1800_v1 = vld [vmem:[#allocation5 + $0x8] sm:$0xff]   ;;  %s2425_s17 = scalar_lea.vmem [#allocation11], %s2316_s10  ;;  %s2439_s24 = scalar_lea.vmem [#allocation10], %s2316_s10 }
  0x88   : > { %1601 = vmatprep.subr.bf16.mxu0 %v1799_v0  ;;  %v1801_v2 = vld [vmem:[#allocation5 + $0x10] sm:$0xff]   ;;  %v1802_v3 = vld [vmem:[#allocation5 + $0x18] sm:$0xff]   ;;  %v1807_v4 = vld [vmem:[%s2320_s15] sm:$0xff]   ;;  %s1183_s25 = sshll.u32 %s2439_s24, 4  ;;  %s1457_s20 = sshll.u32 %s2129_s9, 10  ;;  %s2449_s25 = int_to_ptr.vmem [resolvable:$true] %s1183_s25 }
  0x89   : > { %1602 = vmatpush3.bf16.msra.mxu0 %v1799_v0  ;;  %1617 = vmatprep.mubr.bf16.mxu0 %v1807_v4  ;;  %v1803_v5 = vld [vmem:[#allocation5 + $0x20] sm:$0xff]   ;;  %v1804_v6 = vld [vmem:[#allocation5 + $0x28] sm:$0xff]   ;;  %v1805_v9 = vld [vmem:[#allocation5 + $0x30] sm:$0xff]   ;;  %s2456_s27 = scalar_lea.hbm %s2561_s7, %s1457_s20  ;;  %s1945_s11 = scalar_lea.vmem %s2449_s25, 1024 }
  0x8a   : > { %1603 = vmatprep.subr.bf16.mxu0 %v1800_v1  ;;  %v1815_v7 = vld [vmem:[#allocation7] sm:$0xff]   ;;  %v1816_v8 = vld [vmem:[#allocation7 + $0x8] sm:$0xff]   ;;  %v1817_v10 = vld [vmem:[#allocation7 + $0x10] sm:$0xff]   ;;  %p1946_p10 = scmp.ne.s32.totalorder %s2449_s25, %s1945_s11  ;;  %s2059_s13 = smov [#allocation10]  }
  0x8b   : > { %1633 = vmatprep.subr.bf16.mxu1 %v1815_v7  ;;  %v1806_v11 = vld [vmem:[#allocation5 + $0x38] sm:$0xff]   ;;  %v1819_v13 = vld [vmem:[#allocation7 + $0x20] sm:$0xff]   ;;  %v1808_v14 = vld [vmem:[%s2320_s15 + $0x8] sm:$0xff]   ;;  %s1949_s19 = sshll.u32 %s2059_s13, 4  ;;  %s1950_s19 = int_to_ptr.vmem [resolvable:$false] %s1949_s19 }
  0x8c   : > { %1634 = vmatpush3.bf16.msra.mxu1 %v1815_v7  ;;  %v1818_v12 = vld [vmem:[#allocation7 + $0x18] sm:$0xff]   ;;  %v1809_v15 = vld [vmem:[%s2320_s15 + $0x10] sm:$0xff]   ;;  %v1820_v16 = vld [vmem:[#allocation7 + $0x28] sm:$0xff]   ;;  %p1947_p3 = pnand %p1946_p10, %p2262_p5  ;;  %s1951_s21 = scalar_lea.vmem %s1950_s19, 2048 }
  0x8d   : > { %1604 = vmatpush3.bf16.msra.mxu0 %v1800_v1  ;;  %1635 = vmatprep.subr.bf16.mxu1 %v1816_v8  ;;  %v1810_v17 = vld [vmem:[%s2320_s15 + $0x18] sm:$0xff]   ;;  %v2339_v18 = vld [vmem:[%s2320_s15 + $0x20] sm:$0xff]   ;;  %v2343_v19 = vld [vmem:[%s2320_s15 + $0x28] sm:$0xff]   ;;  %p1952_p12 = scmp.lt.s32.totalorder %s2449_s25, %s1950_s19  ;;  %p1953_p1 = scmp.lt.s32.totalorder %s1951_s21, %s1945_s11 }
  0x8e   : > { %1605 = vmatprep.subr.bf16.mxu0 %v1801_v2  ;;  %v2346_v20 = vld [vmem:[%s2320_s15 + $0x30] sm:$0xff]   ;;  %v2351_v21 = vld [vmem:[%s2320_s15 + $0x38] sm:$0xff]   ;;  %v1823_v24 = vld [vmem:[#allocation8] sm:$0xff]   ;;  %s1165_s15 = scalar_lea.sflag [#allocation4], %s2313_s12  ;;  %p1948_p7 = pneg %p1947_p3 }
  0x8f   : > { %v1821_v22 = vld [vmem:[#allocation7 + $0x30] sm:$0xff]   ;;  %v1822_v23 = vld [vmem:[#allocation7 + $0x38] sm:$0xff]   ;;  %v1824_v25 = vld [vmem:[#allocation8 + $0x8] sm:$0xff]   ;;  %p1954_p2 = por %p1953_p1, %p1952_p12 }
  0x90   : > { %1636 = vmatpush3.bf16.msra.mxu1 %v1816_v8  ;;  %v2354_v26 = vld [vmem:[#allocation8 + $0x10] sm:$0xff]   ;;  %v2358_v27 = vld [vmem:[#allocation8 + $0x18] sm:$0xff]   ;;  %v2362_v28 = vld [vmem:[#allocation8 + $0x20] sm:$0xff]  }
  0x91   : > { %1606 = vmatpush3.bf16.msra.mxu0 %v1801_v2  ;;  %1637 = vmatprep.subr.bf16.mxu1 %v1817_v10  ;;  %v2366_v29 = vld [vmem:[#allocation8 + $0x28] sm:$0xff]   ;;  %v2370_v30 = vld [vmem:[#allocation8 + $0x30] sm:$0xff]   ;;  %v2374_v31 = vld [vmem:[#allocation8 + $0x38] sm:$0xff]   ;;  %p1955_p4 = pnand %p1954_p2, %p1948_p7 }
  0x92   : > { %1607 = vmatprep.subr.bf16.mxu0 %v1802_v3  ;;  %v2381_v32 = vld [vmem:[%s2556_s2] ss:$0 sm:$0xff] }
  0x94   : > { %1638 = vmatpush3.bf16.msra.mxu1 %v1817_v10 }
  0x95   : > { %1608 = vmatpush3.bf16.msra.mxu0 %v1802_v3  ;;  %1639 = vmatprep.subr.bf16.mxu1 %v1818_v12 }
  0x96   : > { %1609 = vmatprep.subr.bf16.mxu0 %v1803_v5 }
  0x98   : > { %1640 = vmatpush3.bf16.msra.mxu1 %v1818_v12 }
  0x99   : > { %1610 = vmatpush3.bf16.msra.mxu0 %v1803_v5  ;;  %1641 = vmatprep.subr.bf16.mxu1 %v1819_v13 }
  0x9a   : > { %1611 = vmatprep.subr.bf16.mxu0 %v1804_v6 }
  0x9c   : > { %1642 = vmatpush3.bf16.msra.mxu1 %v1819_v13 }
  0x9d   : > { %1612 = vmatpush3.bf16.msra.mxu0 %v1804_v6  ;;  %1643 = vmatprep.subr.bf16.mxu1 %v1820_v16 }
  0x9e   : > { %1613 = vmatprep.subr.bf16.mxu0 %v1805_v9 }
  0xa0   : > { %1644 = vmatpush3.bf16.msra.mxu1 %v1820_v16 }
  0xa1   : > { %1614 = vmatpush3.bf16.msra.mxu0 %v1805_v9  ;;  %1645 = vmatprep.subr.bf16.mxu1 %v1821_v22 }
  0xa2   : > { %1615 = vmatprep.subr.bf16.mxu0 %v1806_v11 }
  0xa4   : > { %1646 = vmatpush3.bf16.msra.mxu1 %v1821_v22 }
  0xa5   : > { %1616 = vmatpush3.bf16.msra.mxu0 %v1806_v11  ;;  %1647 = vmatprep.subr.bf16.mxu1 %v1822_v23 }
  0xa6   : > { %1665 = vmatprep.subr.bf16.mxu0 %v1823_v24 }
  0xa8   : > { %1618 = vmatmul.mubr.bf16.vlgmr.msra.gmra.mrb[0].mxu0 %v1808_v14  ;;  %1648 = vmatpush3.bf16.msra.mxu1 %v1822_v23 }
  0xa9   : > { %1621 = vmatprep.mubr.bf16.mxu0 %v1809_v15  ;;  %1666 = vmatpush3.bf16.msra.mxu0 %v1823_v24 }
  0xaa   : > { %1697 = vmatprep.subr.bf16.mxu1 %v1823_v24  ;;  %1667 = vmatprep.subr.bf16.mxu0 %v1824_v25 }
  0xad   : > { %1668 = vmatpush3.bf16.msra.mxu0 %v1824_v25 }
  0xae   : > { %1669 = vmatprep.subr.bf16.mxu0 %v2354_v26 }
  0xb0   : > { %1622 = vmatmul.mubr.bf16.gmra.mrb[4].mxu0 %v1810_v17 }
  0xb1   : > { %1625 = vmatprep.mubr.bf16.mxu0 %v2339_v18  ;;  %1670 = vmatpush3.bf16.msra.mxu0 %v2354_v26 }
  0xb2   : > { %1671 = vmatprep.subr.bf16.mxu0 %v2358_v27 }
  0xb5   : > { %1672 = vmatpush3.bf16.msra.mxu0 %v2358_v27 }
  0xb6   : > { %1673 = vmatprep.subr.bf16.mxu0 %v2362_v28 }
  0xb8   : > { %1626 = vmatmul.mubr.bf16.gmra.mrb[8].mxu0 %v2343_v19 }
  0xb9   : > { %1629 = vmatprep.mubr.bf16.mxu0 %v2346_v20  ;;  %1674 = vmatpush3.bf16.msra.mxu0 %v2362_v28 }
  0xba   : > { %1675 = vmatprep.subr.bf16.mxu0 %v2366_v29 }
  0xbd   : > { %1676 = vmatpush3.bf16.msra.mxu0 %v2366_v29 }
  0xbe   : > { %1677 = vmatprep.subr.bf16.mxu0 %v2370_v30 }
  0xc0   : > { %1630 = vmatmul.mubr.bf16.gmra.mrb[12].mxu0 %v2351_v21 }
  0xc1   : > { %1681 = vmatprep.mubr.bf16.mxu0 %v1807_v4  ;;  %1678 = vmatpush3.bf16.msra.mxu0 %v2370_v30 }
  0xc2   : > { %1679 = vmatprep.subr.bf16.mxu0 %v2374_v31 }
  0xc5   : > { %1680 = vmatpush3.bf16.msra.mxu0 %v2374_v31 }
  0xc8   : > { %1682 = vmatmul.mubr.bf16.vlgmr.msra.gmra.mrb[16].mxu0 %v1808_v14 }
  0xc9   : > { %1685 = vmatprep.mubr.bf16.mxu0 %v1809_v15 }
  0xd0   : > { %1686 = vmatmul.mubr.bf16.gmra.mrb[20].mxu0 %v1810_v17 }
 0x17b   : > { %v1619_v33 = vpop.f32.mrb[0].mxu0 }
 0x17c   : > { %v558_v34 = vadd.f32 %v1619_v33, %v2381_v32  ;;  %v549_v35 = vpop.f32.mrb[1].mxu0 }
 0x17d   : > { %v550_v36 = vadd.f32 %v2381_v32, %v549_v35  ;;  %v1620_v37 = vpop.f32.mrb[2].mxu0 }
 0x17e   : > { %v561_v38 = vadd.f32 %v1620_v37, %v2381_v32  ;;  %v552_v39 = vpop.f32.mrb[3].mxu0  ;;  %v614_v41 = vmax.f32 %v558_v34, 0.0 }
 0x17f   : > { %v553_v40 = vadd.f32 %v2381_v32, %v552_v39  ;;  %v612_v43 = vmax.f32 %v550_v36, 0.0 }
 0x180   : > { %v615_v42 = vmax.f32 %v561_v38, 0.0 }
 0x181   : > { %v613_v44 = vmax.f32 %v553_v40, 0.0 }
 0x182   : > { %v629_v45 = vpack.c.bf16 %v615_v42, %v614_v41 }
 0x183   : > { %v1623_v46 = vpop.f32.mrb[4].mxu0  ;;  %v628_v47 = vpack.c.bf16 %v613_v44, %v612_v43 }
 0x184   : > { %v574_v48 = vadd.f32 %v1623_v46, %v2381_v32  ;;  %v565_v49 = vpop.f32.mrb[5].mxu0 }
 0x185   : > { %v566_v50 = vadd.f32 %v2381_v32, %v565_v49  ;;  %v1624_v51 = vpop.f32.mrb[6].mxu0  ;;  %1649 = vmatprep.mubr.bf16.mxu1 %v628_v47 }
 0x186   : > { %v577_v52 = vadd.f32 %v1624_v51, %v2381_v32  ;;  %v568_v53 = vpop.f32.mrb[7].mxu0  ;;  %1650 = vmatmul.mubr.bf16.vlgmr.msra.gmra.mrb[0].mxu1 %v629_v45  ;;  %v618_v55 = vmax.f32 %v574_v48, 0.0 }
 0x187   : > { %v569_v54 = vadd.f32 %v2381_v32, %v568_v53  ;;  %1705 = vmatpush3.bf16.msra.mxu1 %v1823_v24  ;;  %v616_v57 = vmax.f32 %v566_v50, 0.0 }
 0x188   : > { %v619_v56 = vmax.f32 %v577_v52, 0.0  ;;  %1698 = vmatprep.subr.bf16.mxu1 %v1824_v25 }
 0x189   : > { %v617_v58 = vmax.f32 %v569_v54, 0.0  ;;  %v1366_v54 = vld [vmem:[%s2558_s4] ss:$0 sm:$0xff] }
 0x18a   : > { %v631_v59 = vpack.c.bf16 %v619_v56, %v618_v55 }
 0x18b   : > { %v630_v60 = vpack.c.bf16 %v617_v58, %v616_v57  ;;  %1706 = vmatpush3.bf16.msra.mxu1 %v1824_v25  ;;  %v1627_v61 = vpop.f32.mrb[8].mxu0 }
 0x18c   : > { %v590_v62 = vadd.f32 %v1627_v61, %v2381_v32  ;;  %v581_v63 = vpop.f32.mrb[9].mxu0  ;;  %1699 = vmatprep.subr.bf16.mxu1 %v2354_v26 }
 0x18d   : > { %v582_v0 = vadd.f32 %v2381_v32, %v581_v63  ;;  %v1628_v1 = vpop.f32.mrb[10].mxu0  ;;  %1653 = vmatprep.mubr.bf16.mxu1 %v630_v60 }
 0x18e   : > { %v593_v2 = vadd.f32 %v1628_v1, %v2381_v32  ;;  %v584_v3 = vpop.f32.mrb[11].mxu0  ;;  %1654 = vmatmul.mubr.bf16.gmra.mrb[4].mxu1 %v631_v59  ;;  %v622_v5 = vmax.f32 %v590_v62, 0.0 }
 0x18f   : > { %v585_v4 = vadd.f32 %v2381_v32, %v584_v3  ;;  %1707 = vmatpush3.bf16.msra.mxu1 %v2354_v26  ;;  %v620_v7 = vmax.f32 %v582_v0, 0.0 }
 0x190   : > { %v623_v6 = vmax.f32 %v593_v2, 0.0  ;;  %1700 = vmatprep.subr.bf16.mxu1 %v2358_v27 }
 0x191   : > { %v621_v8 = vmax.f32 %v585_v4, 0.0 }
 0x192   : > { %v633_v9 = vpack.c.bf16 %v623_v6, %v622_v5 }
 0x193   : > { %v632_v10 = vpack.c.bf16 %v621_v8, %v620_v7  ;;  %1708 = vmatpush3.bf16.msra.mxu1 %v2358_v27  ;;  %v1631_v11 = vpop.f32.mrb[12].mxu0 }
 0x194   : > { %v606_v12 = vadd.f32 %v1631_v11, %v2381_v32  ;;  %v597_v13 = vpop.f32.mrb[13].mxu0  ;;  %1701 = vmatprep.subr.bf16.mxu1 %v2362_v28 }
 0x195   : > { %v598_v14 = vadd.f32 %v2381_v32, %v597_v13  ;;  %v1632_v15 = vpop.f32.mrb[14].mxu0  ;;  %1657 = vmatprep.mubr.bf16.mxu1 %v632_v10 }
 0x196   : > { %v609_v16 = vadd.f32 %v1632_v15, %v2381_v32  ;;  %v600_v17 = vpop.f32.mrb[15].mxu0  ;;  %1658 = vmatmul.mubr.bf16.gmra.mrb[8].mxu1 %v633_v9  ;;  %v626_v23 = vmax.f32 %v606_v12, 0.0 }
 0x197   : > { %v601_v22 = vadd.f32 %v2381_v32, %v600_v17  ;;  %1709 = vmatpush3.bf16.msra.mxu1 %v2362_v28  ;;  %v624_v25 = vmax.f32 %v598_v14, 0.0 }
 0x198   : > { %v627_v24 = vmax.f32 %v609_v16, 0.0  ;;  %1702 = vmatprep.subr.bf16.mxu1 %v2366_v29 }
 0x199   : > { %v625_v26 = vmax.f32 %v601_v22, 0.0 }
 0x19a   : > { %v635_v27 = vpack.c.bf16 %v627_v24, %v626_v23 }
 0x19b   : > { %v634_v33 = vpack.c.bf16 %v625_v26, %v624_v25  ;;  %1710 = vmatpush3.bf16.msra.mxu1 %v2366_v29  ;;  %v1683_v28 = vpop.f32.mrb[16].mxu0 }
 0x19c   : > { %1703 = vmatprep.subr.bf16.mxu1 %v2370_v30  ;;  %v1005_v29 = vpop.f32.mrb[17].mxu0 }
 0x19d   : > { %1661 = vmatprep.mubr.bf16.mxu1 %v634_v33  ;;  %v1684_v32 = vpop.f32.mrb[18].mxu0 }
 0x19e   : > { %1662 = vmatmul.mubr.bf16.gmra.mrb[12].mxu1 %v635_v27 }
 0x19f   : > { %1711 = vmatpush3.bf16.msra.mxu1 %v2370_v30  ;;  %1689 = vmatprep.mubr.bf16.mxu1 %v2339_v18  ;;  %v2418_v30 = vld [vmem:[%s2560_s6] ss:$0 sm:$0xff]  ;;  %v1008_v18 = vpop.f32.mrb[19].mxu0 }
 0x1a0   : > { %1704 = vmatprep.subr.bf16.mxu1 %v2374_v31  ;;  %v1014_v34 = vadd.f32 %v1683_v28, %v2418_v30 }
 0x1a2   : > { %v1070_v35 = vmax.f32 %v1014_v34, 0.0 }
 0x1a3   : > { %1712 = vmatpush3.bf16.msra.mxu1 %v2374_v31  ;;  %v1006_v31 = vadd.f32 %v2418_v30, %v1005_v29  ;;  %v1687_v40 = vpop.f32.mrb[20].mxu0 }
 0x1a4   : > { %v1021_v41 = vpop.f32.mrb[21].mxu0  ;;  %v1030_v44 = vadd.f32 %v1687_v40, %v2418_v30 }
 0x1a5   : > { %v1688_v42 = vpop.f32.mrb[22].mxu0  ;;  %v1022_v45 = vadd.f32 %v2418_v30, %v1021_v41 }
 0x1a6   : > { %1690 = vmatmul.mubr.bf16.vlgmr.msra.gmra.mrb[16].mxu1 %v2343_v19  ;;  %v1017_v19 = vadd.f32 %v1684_v32, %v2418_v30  ;;  %v1024_v43 = vpop.f32.mrb[23].mxu0  ;;  %v1033_v46 = vadd.f32 %v1688_v42, %v2418_v30  ;;  %v1074_v48 = vmax.f32 %v1030_v44, 0.0 }
 0x1a7   : > { %1693 = vmatprep.mubr.bf16.mxu1 %v2346_v20  ;;  %v1009_v20 = vadd.f32 %v2418_v30, %v1008_v18  ;;  %v1025_v47 = vadd.f32 %v2418_v30, %v1024_v43  ;;  %v1072_v49 = vmax.f32 %v1022_v45, 0.0 }
 0x1a8   : > { %v1071_v36 = vmax.f32 %v1017_v19, 0.0  ;;  %v1075_v50 = vmax.f32 %v1033_v46, 0.0 }
 0x1a9   : > { %v1069_v37 = vmax.f32 %v1009_v20, 0.0  ;;  %v1073_v51 = vmax.f32 %v1025_v47, 0.0 }
 0x1aa   : > { %v1507_v38 = vpack.c.bf16 %v1071_v36, %v1070_v35  ;;  %v1517_v52 = vpack.c.bf16 %v1075_v50, %v1074_v48 }
 0x1ab   : > { %v1512_v53 = vpack.c.bf16 %v1073_v51, %v1072_v49 }
 0x1ac   : > { %1546 = vst [vmem:[%s2425_s17 + $0x8] sm:$0xff] %v1507_v38   ;;  %1548 = vst [vmem:[%s2425_s17 + $0x18] sm:$0xff] %v1517_v52  }
 0x1ad   : > { %1547 = vst [vmem:[%s2425_s17 + $0x10] sm:$0xff] %v1512_v53  }
 0x1ae   : > { %1694 = vmatmul.mubr.bf16.gmra.mrb[20].mxu1 %v2351_v21  ;;  %v1068_v21 = vmax.f32 %v1006_v31, 0.0 }
 0x1b0   : > { %v1502_v39 = vpack.c.bf16 %v1069_v37, %v1068_v21 }
 0x1b2   : > { %1503 = vst [vmem:[%s2425_s17] sm:$0xff] %v1502_v39  }
 0x259   : > { %v1651_v55 = vpop.f32.mrb[0].mxu1 }
 0x25a   : > { %v750_v56 = vadd.f32 %v1651_v55, %v1366_v54  ;;  %v741_v57 = vpop.f32.mrb[1].mxu1 }
 0x25b   : > { %v742_v58 = vadd.f32 %v1366_v54, %v741_v57  ;;  %v1652_v59 = vpop.f32.mrb[2].mxu1 }
 0x25c   : > { %v753_v60 = vadd.f32 %v1652_v59, %v1366_v54  ;;  %v744_v61 = vpop.f32.mrb[3].mxu1  ;;  %v806_v63 = vmax.f32 %v750_v56, 0.0 }
 0x25d   : > { %v745_v62 = vadd.f32 %v1366_v54, %v744_v61  ;;  %v804_v1 = vmax.f32 %v742_v58, 0.0 }
 0x25e   : > { %v807_v0 = vmax.f32 %v753_v60, 0.0 }
 0x25f   : > { %v805_v2 = vmax.f32 %v745_v62, 0.0 }
 0x260   : > { %v1467_v3 = vpack.c.bf16 %v807_v0, %v806_v63 }
 0x261   : > { %v1462_v4 = vpack.c.bf16 %v805_v2, %v804_v1  ;;  %v1655_v5 = vpop.f32.mrb[4].mxu1 }
 0x262   : > { %1539 = vst [vmem:[%s2439_s24 + $0x8] sm:$0xff] %v1467_v3   ;;  %v766_v6 = vadd.f32 %v1655_v5, %v1366_v54  ;;  %v757_v7 = vpop.f32.mrb[5].mxu1 }
 0x263   : > { %1463 = vst [vmem:[%s2439_s24] sm:$0xff] %v1462_v4   ;;  %v758_v8 = vadd.f32 %v1366_v54, %v757_v7  ;;  %v1656_v9 = vpop.f32.mrb[6].mxu1 }
 0x264   : > { %v769_v10 = vadd.f32 %v1656_v9, %v1366_v54  ;;  %v760_v11 = vpop.f32.mrb[7].mxu1  ;;  %v810_v13 = vmax.f32 %v766_v6, 0.0 }
 0x265   : > { %v761_v12 = vadd.f32 %v1366_v54, %v760_v11  ;;  %v808_v15 = vmax.f32 %v758_v8, 0.0 }
 0x266   : > { %v811_v14 = vmax.f32 %v769_v10, 0.0 }
 0x267   : > { %v809_v16 = vmax.f32 %v761_v12, 0.0 }
 0x268   : > { %v1477_v17 = vpack.c.bf16 %v811_v14, %v810_v13 }
 0x269   : > { %v1472_v22 = vpack.c.bf16 %v809_v16, %v808_v15  ;;  %v1659_v23 = vpop.f32.mrb[8].mxu1 }
 0x26a   : > { %1541 = vst [vmem:[%s2439_s24 + $0x18] sm:$0xff] %v1477_v17   ;;  %v782_v24 = vadd.f32 %v1659_v23, %v1366_v54  ;;  %v773_v25 = vpop.f32.mrb[9].mxu1 }
 0x26b   : > { %1540 = vst [vmem:[%s2439_s24 + $0x10] sm:$0xff] %v1472_v22   ;;  %v774_v26 = vadd.f32 %v1366_v54, %v773_v25  ;;  %v1660_v27 = vpop.f32.mrb[10].mxu1 }
 0x26c   : > { %v785_v33 = vadd.f32 %v1660_v27, %v1366_v54  ;;  %v776_v28 = vpop.f32.mrb[11].mxu1  ;;  %v814_v32 = vmax.f32 %v782_v24, 0.0 }
 0x26d   : > { %v777_v29 = vadd.f32 %v1366_v54, %v776_v28  ;;  %v812_v34 = vmax.f32 %v774_v26, 0.0 }
 0x26e   : > { %v815_v18 = vmax.f32 %v785_v33, 0.0 }
 0x26f   : > { %v813_v31 = vmax.f32 %v777_v29, 0.0 }
 0x270   : > { %v1487_v19 = vpack.c.bf16 %v815_v18, %v814_v32 }
 0x271   : > { %v1482_v20 = vpack.c.bf16 %v813_v31, %v812_v34  ;;  %v1663_v35 = vpop.f32.mrb[12].mxu1 }
 0x272   : > { %1543 = vst [vmem:[%s2439_s24 + $0x28] sm:$0xff] %v1487_v19   ;;  %v798_v21 = vadd.f32 %v1663_v35, %v1366_v54  ;;  %v789_v36 = vpop.f32.mrb[13].mxu1 }
 0x273   : > { %1542 = vst [vmem:[%s2439_s24 + $0x20] sm:$0xff] %v1482_v20   ;;  %v790_v37 = vadd.f32 %v1366_v54, %v789_v36  ;;  %v1664_v38 = vpop.f32.mrb[14].mxu1 }
 0x274   : > { %v801_v39 = vadd.f32 %v1664_v38, %v1366_v54  ;;  %v792_v40 = vpop.f32.mrb[15].mxu1  ;;  %v818_v42 = vmax.f32 %v798_v21, 0.0 }
 0x275   : > { %v793_v41 = vadd.f32 %v1366_v54, %v792_v40  ;;  %v816_v44 = vmax.f32 %v790_v37, 0.0 }
 0x276   : > { %v819_v43 = vmax.f32 %v801_v39, 0.0 }
 0x277   : > { %v817_v45 = vmax.f32 %v793_v41, 0.0 }
 0x278   : > { %v1497_v46 = vpack.c.bf16 %v819_v43, %v818_v42 }
 0x279   : > { %v1492_v47 = vpack.c.bf16 %v817_v45, %v816_v44  ;;  %v1691_v48 = vpop.f32.mrb[16].mxu1 }
 0x27a   : > { %1545 = vst [vmem:[%s2439_s24 + $0x38] sm:$0xff] %v1497_v46   ;;  %v1046_v49 = vadd.f32 %v1691_v48, %v2418_v30  ;;  %v1037_v50 = vpop.f32.mrb[17].mxu1 }
 0x27b   : > { %1544 = vst [vmem:[%s2439_s24 + $0x30] sm:$0xff] %v1492_v47   ;;  %v1038_v51 = vadd.f32 %v2418_v30, %v1037_v50  ;;  %v1692_v52 = vpop.f32.mrb[18].mxu1 }
 0x27c   : > { %v1049_v53 = vadd.f32 %v1692_v52, %v2418_v30  ;;  %v1040_v54 = vpop.f32.mrb[19].mxu1 }
 0x27d   : > { %1958 = shalt.err (!%p1955_p4)
}
 0x27e   : > { %s1959_s18 = scalar_lea.hbm %s2456_s27, 1024  ;;  %s1963_s14 = scalar_lea.hbm %s2561_s7, 2048 }
 0x27f   : > { %p1960_p9 = scmp.ne.s32.totalorder %s2456_s27, %s1959_s18  ;;  %p1964_p8 = scmp.lt.u32.totalorder %s2456_s27, %s2561_s7 }
 0x280   : > { %p1965_p13 = scmp.lt.u32.totalorder %s1963_s14, %s1959_s18  ;;  %p1967_p10 = scmp.lt.u32.totalorder %s1959_s18, %s2456_s27 }
 0x281   : > { %p1961_p0 = pnand %p1960_p9, %p2262_p5 }
 0x282   : > { %p1966_p6 = por %p1965_p13, %p1964_p8 }
 0x283   : > { %p1962_p11 = pneg %p1961_p0 }
 0x284   : > { %p1968_p3 = por %p1967_p10, %p1966_p6 }
 0x286   : > { %p1969_p7 = pnand %p1968_p3, %p1962_p11 }
 0x288   : > { %1972 = shalt.err (!%p1969_p7)
}
 0x289   : > { %s2060_s11 = smov 64   ;;  %s2061_s19 = smov 4   ;;  %v1041_v55 = vadd.f32 %v2418_v30, %v1040_v54  ;;  %v1078_v56 = vmax.f32 %v1046_v49, 0.0  ;;  %v1079_v57 = vmax.f32 %v1049_v53, 0.0  ;;  %v1076_v58 = vmax.f32 %v1038_v51, 0.0  ;;  %v1695_v62 = vpop.f32.mrb[20].mxu1 }
 0x28a   : > { %1727 = dma.vmem_to_hbm [thread:$0]  (%p2262_p5), %s2449_s25, 1024, %s2456_s27, %s1165_s15, %s2060_s11, %s2060_s11, %s2061_s19   ;;  %v1062_v63 = vadd.f32 %v1695_v62, %v2418_v30  ;;  %v1053_v0 = vpop.f32.mrb[21].mxu1 }
 0x28b   : > { %v1077_v59 = vmax.f32 %v1041_v55, 0.0  ;;  %v1527_v60 = vpack.c.bf16 %v1079_v57, %v1078_v56  ;;  %v1054_v1 = vadd.f32 %v2418_v30, %v1053_v0  ;;  %v1696_v2 = vpop.f32.mrb[22].mxu1  ;;  %s1199_s25 = sshll.u32 %s2425_s17, 4  ;;  %s2505_s21 = scalar_lea.hbm %s2562_s8, %s1457_s20  ;;  %s2498_s25 = int_to_ptr.vmem [resolvable:$true] %s1199_s25 }
 0x28c   : > { %v1065_v3 = vadd.f32 %v1696_v2, %v2418_v30  ;;  %v1056_v4 = vpop.f32.mrb[23].mxu1  ;;  %v1082_v6 = vmax.f32 %v1062_v63, 0.0  ;;  %s1170_s18 = scalar_lea.sflag [#allocation12], %s2313_s12  ;;  %s1973_s16 = scalar_lea.vmem %s2498_s25, 1024 }
 0x28d   : > { %v1522_v61 = vpack.c.bf16 %v1077_v59, %v1076_v58  ;;  %1550 = vst [vmem:[%s2425_s17 + $0x28] sm:$0xff] %v1527_v60   ;;  %v1057_v5 = vadd.f32 %v2418_v30, %v1056_v4  ;;  %v1080_v8 = vmax.f32 %v1054_v1, 0.0  ;;  %p1974_p12 = scmp.ne.s32.totalorder %s2498_s25, %s1973_s16  ;;  %s2062_s24 = smov [#allocation11]  }
 0x28e   : > { %v1083_v7 = vmax.f32 %v1065_v3, 0.0  ;;  %s1977_s14 = sshll.u32 %s2062_s24, 4  ;;  %s1978_s14 = int_to_ptr.vmem [resolvable:$false] %s1977_s14 }
 0x28f   : > { %1549 = vst [vmem:[%s2425_s17 + $0x20] sm:$0xff] %v1522_v61   ;;  %v1081_v9 = vmax.f32 %v1057_v5, 0.0  ;;  %p1975_p1 = pnand %p1974_p12, %p2262_p5  ;;  %s1979_s10 = scalar_lea.vmem %s1978_s14, 2048 }
 0x290   : > { %v1537_v10 = vpack.c.bf16 %v1083_v7, %v1082_v6  ;;  %p1980_p4 = scmp.lt.s32.totalorder %s2498_s25, %s1978_s14  ;;  %p1981_p9 = scmp.lt.s32.totalorder %s1979_s10, %s1973_s16 }
 0x291   : > { %v1532_v11 = vpack.c.bf16 %v1081_v9, %v1080_v8  ;;  %p1976_p2 = pneg %p1975_p1 }
 0x292   : > { %1552 = vst [vmem:[%s2425_s17 + $0x38] sm:$0xff] %v1537_v10   ;;  %p1982_p0 = por %p1981_p9, %p1980_p4 }
 0x293   : > { %1551 = vst [vmem:[%s2425_s17 + $0x30] sm:$0xff] %v1532_v11  }
 0x294   : > { %p1983_p11 = pnand %p1982_p0, %p1976_p2 }
 0x296   : > { %1986 = shalt.err (!%p1983_p11)
}
 0x297   : > { %s1987_s9 = scalar_lea.hbm %s2505_s21, 1024  ;;  %s1991_s13 = scalar_lea.hbm %s2562_s8, 2048 }
 0x298   : > { %p1988_p8 = scmp.ne.s32.totalorder %s2505_s21, %s1987_s9  ;;  %p1992_p10 = scmp.lt.u32.totalorder %s2505_s21, %s2562_s8 }
 0x299   : > { %p1993_p3 = scmp.lt.u32.totalorder %s1991_s13, %s1987_s9  ;;  %p1995_p12 = scmp.lt.u32.totalorder %s1987_s9, %s2505_s21 }
 0x29a   : > { %p1989_p13 = pnand %p1988_p8, %p2262_p5 }
 0x29b   : > { %p1994_p7 = por %p1993_p3, %p1992_p10 }
 0x29c   : > { %p1990_p6 = pneg %p1989_p13 }
 0x29d   : > { %p1996_p1 = por %p1995_p12, %p1994_p7 }
 0x29f   : > { %p1997_p2 = pnand %p1996_p1, %p1990_p6 }
 0x2a1   : > { %2000 = shalt.err (!%p1997_p2)
}
 0x2a2   : > { %1728 = dma.vmem_to_hbm [thread:$0]  (%p2262_p5), %s2498_s25, 1024, %s2505_s21, %s1170_s18, %s2060_s11, %s2060_s11, %s2061_s19  }
 0x2a3 PF: > { %s2584_s16 = sld [smem:[#allocation18_spill]]  ;;  %s2585_s24 = sld [smem:[#allocation19_spill]] }
 0x2a4   : > { %p2587_p9 = scmp.ge.s32.totalorder %s2051_s30, 2 }
 0x2a9   : > { %s1214_s14 = sand.u32 1, %s2584_s16   ;;  %p2586_p4 = scmp.ne.s32.totalorder %s2585_s24, 0 }
 0x2aa   : > { %s1215_s10 = scalar_lea.sflag [#allocation4], %s1214_s14 }
 0x2ab   : > { %p1746_p0 = pnand %p2587_p9, %p2586_p4 }
 0x2ad   : > { %2030 = dma.done.wait (!%p1746_p0), %s1215_s10, 1024  }
 0x2ae   : > { %2032 = vsyncadd (!%p1746_p0), %s1215_s10, 4294966272  ;;  %s1224_s23 = scalar_lea.sflag [#allocation12], %s1214_s14 }
 0x2af   : > { %2034 = dma.done.wait (!%p1746_p0), %s1224_s23, 1024  }
 0x2b0   : > { %2036 = vsyncadd (!%p1746_p0), %s1224_s23, 4294966272  ;;  %p27_p5 = scmp.ge.s32.totalorder %s2248_s26, 4   ;;  %s2588_s27 = smov %s2043_s28 }
 0x2b1   : > { %s2589_s28 = smov %s2047_s29  ;;  %s2590_s29 = smov %s2258_s22 }
 0x2b2   : > { %s2591_s30 = smov %s2248_s26  ;;  %29 = sbr.rel (!%p27_p5) target bundleno = 9 (0x9), region = 122 }
 0x2b9   :  { %1229 = vsyncpa [#allocation3], 1 }
 0x2ba   :  { %1231 = vsyncpa [#allocation3 + $0x1], 1 }
 0x2bb   :  { %1232 = vsyncpa [#allocation6], 1 }
 0x2bc   :  { %1233 = vsyncpa [#allocation9], 1 }
 0x2bd   :  { %1234 = vsyncpa [#allocation4], 1 }
 0x2be   :  { %1236 = vsyncpa [#allocation4 + $0x1], 1 }
 0x2bf   :  { %1237 = vsyncpa [#allocation12], 1 }
 0x2c0   :  { %1239 = vsyncpa [#allocation12 + $0x1], 1 }

</bundles_post_ra>
